<compile_context>
chip_gen: v6e
topology: v6e:2x2x1
jax: 0.10.0
libtpu: 0.0.40
codegen_flags: <defaults>
</compile_context>

<pallas_src>
import functools

import numpy as np
import jax
import jax.numpy as jnp
from jax import lax
from jax.experimental import pallas as pl
from jax.experimental.pallas import tpu as pltpu


def _firwin_kaiser(numtaps: int, cutoff: float, width: float, fs: float) -> np.ndarray:
    """Deterministic numpy stand-in for scipy.signal.firwin (kaiser window, pass_zero)."""
    nyq = fs / 2.0
    atten = 2.285 * (numtaps - 1) * np.pi * (width / nyq) + 7.95
    if atten > 50:
        beta = 0.1102 * (atten - 8.7)
    elif atten > 21:
        beta = 0.5842 * (atten - 21) ** 0.4 + 0.07886 * (atten - 21)
    else:
        beta = 0.0
    cutoff_n = cutoff / nyq
    m_idx = np.arange(numtaps) - (numtaps - 1) / 2.0
    h = cutoff_n * np.sinc(cutoff_n * m_idx)
    half = (numtaps - 1) / 2.0
    win = np.i0(beta * np.sqrt(np.clip(1.0 - (m_idx / half) ** 2, 0.0, 1.0))) / np.i0(beta)
    h = h * win
    h = h / h.sum()
    return h.astype(np.float32)


def _round_up(a: int, b: int) -> int:
    return (a + b - 1) // b * b


def _is_symmetric(w) -> bool:
    """True iff the FIR taps are palindromic (w[k] == w[K-1-k]). False if w is traced."""
    try:
        wn = np.asarray(jax.device_get(w))
    except Exception:
        return False
    return bool(np.allclose(wn, wn[..., ::-1], rtol=1e-6, atol=1e-9))


def _updown_snake_kernel(x_hbm, w0_ref, w1_ref, alpha_ref, inva_ref, o_ref,
                         xbuf, ybuf, sem, *, L, l_tile, n_inner, halo, k_taps,
                         symmetric, compute_dtype):
    r = pl.program_id(0)              # row tile              (parallel)
    o = pl.program_id(1)              # outer L chunk         (parallel, megacore)
    i = pl.program_id(2)              # inner L tile          (arbitrary / sequential)
    t = o * n_inner + i               # absolute L-tile index

    r_tile = o_ref.shape[0]
    l_blk = xbuf.shape[-1]            # l_tile + 2*halo
    left = (k_taps - 1) // 2          # PyTorch 'same' pad for even K: left=5, right=6
    right = (k_taps - 1) - left
    wy = l_tile + (k_taps - 1)        # intermediate width conv1 needs

    row0 = pl.multiple_of(r * r_tile, 8)

    def in_copy(tt, slot):
        # x_hbm is pre-padded with `halo` zeros on the left, so tile tt's window starts at
        # the 128-aligned column tt*l_tile and covers original positions
        # [tt*l_tile - halo, tt*l_tile + l_tile + halo).
        col0 = pl.multiple_of(tt * l_tile, 128)
        return pltpu.make_async_copy(
            x_hbm.at[pl.ds(row0, r_tile), pl.ds(col0, l_blk)],
            xbuf.at[slot],
            sem.at[slot],
        )

    slot = i % 2

    @pl.when(i == 0)                  # prime at the start of each (row, outer-chunk)
    def _():
        in_copy(t, slot).start()

    in_copy(t, slot).wait()

    @pl.when(i + 1 < n_inner)         # prefetch the next inner tile while computing this one
    def _():
        in_copy(t + 1, 1 - slot).start()

    cdt = compute_dtype
    xv = xbuf.at[slot]                # VMEM ref view; taps read as shifted loads (no full copy)
    w0 = w0_ref[...].astype(cdt)      # (r_tile, K)
    w1 = w1_ref[...].astype(cdt)
    alpha = alpha_ref[...]            # (r_tile, 1) f32
    inva = inva_ref[...]              # (r_tile, 1) f32 = 1/(alpha+eps), hoisted to the wrapper

    def dwconv(load, w, start, width):
        # out[:, j] = sum_k w[:, k] * z[:, start + j + k]   (cross-correlation, as in PyTorch)
        if symmetric:
            # palindromic taps: fold pairs -> half the lane-broadcast multiplies
            acc = w[:, 0:1] * (load(start, width) + load(start + k_taps - 1, width))
            for k in range(1, k_taps // 2):
                acc = acc + w[:, k:k + 1] * (load(start + k, width) +
                                             load(start + k_taps - 1 - k, width))
        else:
            acc = w[:, 0:1] * load(start, width)
            for k in range(1, k_taps):
                acc = acc + w[:, k:k + 1] * load(start + k, width)
        return acc

    def load_x(s, width):
        return xv[:, s:s + width].astype(cdt)

    # lowpass_conv0 on block columns [halo-left, halo+l_tile+right) so conv1 has its halo.
    y = dwconv(load_x, w0, halo - 2 * left, wy).astype(jnp.float32)

    # Snake1d: y + 1/(alpha+eps) * sin(alpha*y)^2   (kept in f32)
    s = jnp.sin(alpha * y)
    y = (y + inva * (s * s)).astype(cdt)

    # Zero samples outside [0, L) so conv1 sees PyTorch's zero 'same' padding.  Only tiles
    # whose y-window touches a boundary pay for the mask (note: the last *real* tile needs
    # it too when L % l_tile < right, hence the `+ right` in the predicate).
    need_mask = jnp.logical_or(t == 0, (t + 1) * l_tile + right > L)

    @pl.when(jnp.logical_not(need_mask))
    def _():
        ybuf[:, 0:wy] = y

    @pl.when(need_mask)
    def _():
        g = t * l_tile - left + lax.broadcasted_iota(jnp.int32, (r_tile, wy), 1)
        ybuf[:, 0:wy] = jnp.where((g >= 0) & (g < L), y, 0.0).astype(cdt)

    def load_y(s2, width):
        return ybuf[:, s2:s2 + width]

    # lowpass_conv1, central (valid) region only -> exactly one (r_tile, l_tile) block.
    out = dwconv(load_y, w1, 0, l_tile)
    o_ref[...] = out.astype(o_ref.dtype)


def updown_snake1d(x, low_pass0, low_pass1, alpha, eps=1e-8,
                   r_tile=None, l_tile=None, compute_dtype=jnp.float32):
    """x: (N, C, L); low_pass{0,1}: (C, 1, K); alpha: (C,).  Returns (N, C, L).

    compute_dtype=jnp.bfloat16 is an optional fast path for v6e/v7x (Snake stays f32);
    keep the default f32 on v5e and for bit-accuracy.
    """
    N, C, L = x.shape
    K = low_pass0.shape[-1]
    left = (K - 1) // 2
    right = (K - 1) - left
    R = N * C

    if r_tile is None:
        r_tile = min(64, _round_up(R, 8))              # multiple of 8 sublanes
    if l_tile is None:
        # big L tiles amortize the fixed 2*128-lane halo re-read + per-grid-step overhead
        l_tile = min(4096, _round_up(L, 128))          # multiple of 128 lanes
    halo = 128                                         # lane-aligned halo >= 2*max(left, right)
    assert r_tile % 8 == 0 and l_tile % 128 == 0
    assert halo >= 2 * max(left, right)
    l_blk = l_tile + 2 * halo
    wy = l_tile + K - 1

    R_pad = _round_up(R, r_tile)
    n_r = R_pad // r_tile
    n_t = pl.cdiv(L, l_tile)

    # v7x megacore: if the row axis is degenerate, split L tiles into 2 parallel chunks so
    # both TensorCores get work.  On 1-TC chips (v5e/v6e) this only costs one extra prime DMA.
    if n_r == 1 and n_t >= 2:
        n_outer = 2
        n_inner = pl.cdiv(n_t, 2)
    else:
        n_outer, n_inner = 1, n_t
    n_t_total = n_outer * n_inner

    L_out = n_t_total * l_tile
    L_in = L_out + 2 * halo

    # Collapse (N, C) -> rows; zero-pad rows and L (left halo + right pad).
    x2 = x.reshape(R, L)
    x_pad = jnp.pad(x2, ((0, R_pad - R), (halo, L_in - halo - L)))

    def rows(p):  # (C, k) -> (R_pad, k); row n*C + c carries channel c's params
        p = jnp.tile(p, (N, 1))
        return jnp.pad(p, ((0, R_pad - R), (0, 0)))

    w0_rows = rows(low_pass0.reshape(C, K).astype(jnp.float32))
    w1_rows = rows(low_pass1.reshape(C, K).astype(jnp.float32))
    alpha_c = alpha.reshape(C, 1).astype(jnp.float32)
    alpha_rows = rows(alpha_c)
    inva_rows = rows(1.0 / (alpha_c + eps))            # reciprocal hoisted out of the kernel

    # Fold palindromic FIR taps (firwin/Kaiser filters) -> half the multiplies per conv.
    symmetric = (K % 2 == 0) and _is_symmetric(low_pass0) and _is_symmetric(low_pass1)

    kernel = functools.partial(
        _updown_snake_kernel, L=L, l_tile=l_tile, n_inner=n_inner, halo=halo,
        k_taps=K, symmetric=symmetric, compute_dtype=compute_dtype)

    itemsize = jnp.dtype(x.dtype).itemsize
    cost = pl.CostEstimate(
        flops=R * L * (4 * K + 8),                     # two depthwise convs + Snake
        transcendentals=R * L,                         # one sin per element
        bytes_accessed=2 * itemsize * R * L)

    out_pad = pl.pallas_call(
        kernel,
        out_shape=jax.ShapeDtypeStruct((R_pad, L_out), x.dtype),
        grid_spec=pltpu.PrefetchScalarGridSpec(
            num_scalar_prefetch=0,
            grid=(n_r, n_outer, n_inner),
            in_specs=[
                pl.BlockSpec(memory_space=pl.ANY),                     # x_pad: manual halo DMA
                pl.BlockSpec((r_tile, K), lambda r, o, i: (r, 0)),     # w0 (per-row taps)
                pl.BlockSpec((r_tile, K), lambda r, o, i: (r, 0)),     # w1
                pl.BlockSpec((r_tile, 1), lambda r, o, i: (r, 0)),     # alpha
                pl.BlockSpec((r_tile, 1), lambda r, o, i: (r, 0)),     # 1/(alpha+eps)
            ],
            out_specs=pl.BlockSpec((r_tile, l_tile),
                                   lambda r, o, i: (r, o * n_inner + i)),
            scratch_shapes=[
                pltpu.VMEM((2, r_tile, l_blk), x.dtype),               # double-buffered input halo
                pltpu.VMEM((r_tile, _round_up(wy, 128)), compute_dtype),  # conv1 input (snake out)
                pltpu.SemaphoreType.DMA((2,)),
            ],
        ),
        compiler_params=pltpu.CompilerParams(
            dimension_semantics=("parallel", "parallel", "arbitrary"),
            vmem_limit_bytes=48 * 1024 * 1024),
        cost_estimate=cost,
    )(x_pad, w0_rows, w1_rows, alpha_rows, inva_rows)

    return out_pad[:R, :L].reshape(N, C, L)


def _reference(x, low_pass0, low_pass1, alpha, eps=1e-8):
    """Pure-JAX reference mirroring the PyTorch forward."""
    def dw(inp, w):
        K = w.shape[-1]
        left = (K - 1) // 2
        right = (K - 1) - left
        xp = jnp.pad(inp, ((0, 0), (0, 0), (left, right)))
        out = jnp.zeros_like(inp)
        for k in range(K):
            out = out + w[:, 0, k][None, :, None] * xp[:, :, k:k + inp.shape[-1]]
        return out

    y = dw(x, low_pass0)
    a = alpha[None, :, None]
    y = y + (1.0 / (a + eps)) * jnp.sin(a * y) ** 2
    y = dw(y, low_pass1)
    return y


if __name__ == "__main__":
    # Module config: in_channels=4, sr=16000, m=2 -> K = 6*m = 12 taps.
    N, C, L = 2, 4, 16
    sr, m = 16000, 2
    K = 6 * m
    eps = 1e-8

    filt = _firwin_kaiser(K, cutoff=sr / (2 * m), width=0.6 / m, fs=sr * m)   # (K,)
    low_pass0 = jnp.asarray(np.tile(filt[None, None, :], (C, 1, 1)))          # (C, 1, K)
    low_pass1 = jnp.asarray(np.tile(filt[None, None, :], (C, 1, 1)))          # (C, 1, K)

    key = jax.random.PRNGKey(0)
    k_alpha, k_x, k_x2 = jax.random.split(key, 3)
    alpha = jax.random.normal(k_alpha, (C,), dtype=jnp.float32)               # torch.randn(C)
    x = jax.random.normal(k_x, (N, C, L), dtype=jnp.float32)

    out = jax.block_until_ready(updown_snake1d(x, low_pass0, low_pass1, alpha, eps=eps))
    ref = jax.block_until_ready(_reference(x, low_pass0, low_pass1, alpha, eps=eps))
    assert out.shape == (N, C, L) and out.dtype == jnp.float32
    np.testing.assert_allclose(np.asarray(out), np.asarray(ref), rtol=1e-5, atol=1e-5)

    # Second small check: multi-tile L path (exercises interior mask-skip, the boundary
    # tiles, the megacore outer/inner split and the padded final tile).
    L2 = 300
    x2 = jax.random.normal(k_x2, (N, C, L2), dtype=jnp.float32)
    out2 = jax.block_until_ready(
        updown_snake1d(x2, low_pass0, low_pass1, alpha, eps=eps, l_tile=128))
    ref2 = jax.block_until_ready(_reference(x2, low_pass0, low_pass1, alpha, eps=eps))
    np.testing.assert_allclose(np.asarray(out2), np.asarray(ref2), rtol=1e-5, atol=1e-5)

    print("KERNEL_OK")
</pallas_src>

<mosaic_0001>
module attributes {stable_mosaic.version = 11 : i64} {
  func.func @_updown_snake_kernel(%arg0: i32, %arg1: i32, %arg2: i32, %arg3: memref<8x384xf32, #tpu.memory_space<any>>, %arg4: memref<8x12xf32, #tpu.memory_space<vmem>>, %arg5: memref<8x12xf32, #tpu.memory_space<vmem>>, %arg6: memref<8x1xf32, #tpu.memory_space<vmem>>, %arg7: memref<8x1xf32, #tpu.memory_space<vmem>>, %arg8: memref<8x128xf32, #tpu.memory_space<vmem>>, %arg9: memref<2x8x384xf32, #tpu.memory_space<vmem>>, %arg10: memref<8x256xf32, #tpu.memory_space<vmem>>, %arg11: memref<2x!tpu.dma_semaphore, #tpu.memory_space<semaphore_mem>>) attributes {dimension_semantics = [#tpu.dimension_semantics<parallel>, #tpu.dimension_semantics<parallel>, #tpu.dimension_semantics<arbitrary>], iteration_bounds = array<i64: 1, 1, 1>, scalar_prefetch = 0 : i64, scratch_operands = 3 : i64, tpu.core_type = #tpu.core_type<tc>, window_params = [{}, {transform_indices = @transform_1, window_bounds = array<i64: 8, 12>}, {transform_indices = @transform_2, window_bounds = array<i64: 8, 12>}, {transform_indices = @transform_3, window_bounds = array<i64: 8, 1>}, {transform_indices = @transform_4, window_bounds = array<i64: 8, 1>}, {transform_indices = @transform_5, window_bounds = array<i64: 8, 128>}]} {
    %c1_i32 = arith.constant 1 : i32
    %0 = arith.muli %arg1, %c1_i32 : i32
    %1 = arith.addi %0, %arg2 : i32
    %c8_i32 = arith.constant 8 : i32
    %2 = arith.muli %arg0, %c8_i32 : i32
    %3 = tpu.assume_multiple %2, 8 : i32
    %c2_i32 = arith.constant 2 : i32
    %c0_i32 = arith.constant 0 : i32
    %4 = arith.cmpi eq, %c2_i32, %c0_i32 : i32
    %c1_i32_0 = arith.constant 1 : i32
    %5 = arith.select %4, %c1_i32_0, %c2_i32 : i32
    %6 = arith.remsi %arg2, %5 : i32
    %c0_i32_1 = arith.constant 0 : i32
    %7 = arith.cmpi ne, %6, %c0_i32_1 : i32
    %c0_i32_2 = arith.constant 0 : i32
    %8 = arith.cmpi slt, %6, %c0_i32_2 : i32
    %c0_i32_3 = arith.constant 0 : i32
    %9 = arith.cmpi slt, %5, %c0_i32_3 : i32
    %10 = arith.xori %8, %9 : i1
    %11 = arith.andi %10, %7 : i1
    %12 = arith.addi %6, %5 : i32
    %13 = arith.select %11, %12, %6 : i32
    %c0_i32_4 = arith.constant 0 : i32
    %14 = arith.cmpi eq, %arg2, %c0_i32_4 : i32
    %15 = arith.extui %14 : i1 to i32
    %c0_i32_5 = arith.constant 0 : i32
    %16 = arith.cmpi ne, %15, %c0_i32_5 : i32
    scf.if %16 {
      %c128_i32_74 = arith.constant 128 : i32
      %157 = arith.muli %1, %c128_i32_74 : i32
      %158 = tpu.assume_multiple %157, 128 : i32
      %159 = tpu.memref_slice %arg3[%3, %158] : memref<8x384xf32, #tpu.memory_space<any>> -> memref<8x384xf32, #tpu.memory_space<any>>
      %c0_i32_75 = arith.constant 0 : i32
      %c0_i32_76 = arith.constant 0 : i32
      %160 = tpu.memref_slice %arg9[%13, %c0_i32_75, %c0_i32_76] : memref<2x8x384xf32, #tpu.memory_space<vmem>> -> memref<1x8x384xf32, #tpu.memory_space<vmem>>
      %161 = tpu.memref_squeeze %160 : memref<1x8x384xf32, #tpu.memory_space<vmem>> -> memref<8x384xf32, #tpu.memory_space<vmem>>
      %162 = tpu.memref_slice %arg11[%13] : memref<2x!tpu.dma_semaphore, #tpu.memory_space<semaphore_mem>> -> memref<1x!tpu.dma_semaphore, #tpu.memory_space<semaphore_mem>>
      %163 = tpu.memref_squeeze %162 : memref<1x!tpu.dma_semaphore, #tpu.memory_space<semaphore_mem>> -> memref<!tpu.dma_semaphore, #tpu.memory_space<semaphore_mem>>
      tpu.enqueue_dma source(%159 : memref<8x384xf32, #tpu.memory_space<any>>) target(%161 : memref<8x384xf32, #tpu.memory_space<vmem>>) target_semaphore(%163 : memref<!tpu.dma_semaphore, #tpu.memory_space<semaphore_mem>>)
    } else {
    }
    %c128_i32 = arith.constant 128 : i32
    %17 = arith.muli %1, %c128_i32 : i32
    %18 = tpu.assume_multiple %17, 128 : i32
    %19 = tpu.memref_slice %arg3[%3, %18] : memref<8x384xf32, #tpu.memory_space<any>> -> memref<8x384xf32, #tpu.memory_space<any>>
    %c0_i32_6 = arith.constant 0 : i32
    %c0_i32_7 = arith.constant 0 : i32
    %20 = tpu.memref_slice %arg9[%13, %c0_i32_6, %c0_i32_7] : memref<2x8x384xf32, #tpu.memory_space<vmem>> -> memref<1x8x384xf32, #tpu.memory_space<vmem>>
    %21 = tpu.memref_squeeze %20 : memref<1x8x384xf32, #tpu.memory_space<vmem>> -> memref<8x384xf32, #tpu.memory_space<vmem>>
    %22 = tpu.memref_slice %arg11[%13] : memref<2x!tpu.dma_semaphore, #tpu.memory_space<semaphore_mem>> -> memref<1x!tpu.dma_semaphore, #tpu.memory_space<semaphore_mem>>
    %23 = tpu.memref_squeeze %22 : memref<1x!tpu.dma_semaphore, #tpu.memory_space<semaphore_mem>> -> memref<!tpu.dma_semaphore, #tpu.memory_space<semaphore_mem>>
    tpu.wait_dma2 semaphore(%23 : memref<!tpu.dma_semaphore, #tpu.memory_space<semaphore_mem>>) src(%19 : memref<8x384xf32, #tpu.memory_space<any>>) dst(%21 : memref<8x384xf32, #tpu.memory_space<vmem>>)
    %c1_i32_8 = arith.constant 1 : i32
    %24 = arith.addi %arg2, %c1_i32_8 : i32
    %c1_i32_9 = arith.constant 1 : i32
    %25 = arith.cmpi slt, %24, %c1_i32_9 : i32
    %26 = arith.extui %25 : i1 to i32
    %c0_i32_10 = arith.constant 0 : i32
    %27 = arith.cmpi ne, %26, %c0_i32_10 : i32
    scf.if %27 {
      %c1_i32_74 = arith.constant 1 : i32
      %157 = arith.addi %1, %c1_i32_74 : i32
      %c1_i32_75 = arith.constant 1 : i32
      %158 = arith.subi %c1_i32_75, %13 : i32
      %c128_i32_76 = arith.constant 128 : i32
      %159 = arith.muli %157, %c128_i32_76 : i32
      %160 = tpu.assume_multiple %159, 128 : i32
      %161 = tpu.memref_slice %arg3[%3, %160] : memref<8x384xf32, #tpu.memory_space<any>> -> memref<8x384xf32, #tpu.memory_space<any>>
      %c0_i32_77 = arith.constant 0 : i32
      %c0_i32_78 = arith.constant 0 : i32
      %162 = tpu.memref_slice %arg9[%158, %c0_i32_77, %c0_i32_78] : memref<2x8x384xf32, #tpu.memory_space<vmem>> -> memref<1x8x384xf32, #tpu.memory_space<vmem>>
      %163 = tpu.memref_squeeze %162 : memref<1x8x384xf32, #tpu.memory_space<vmem>> -> memref<8x384xf32, #tpu.memory_space<vmem>>
      %164 = tpu.memref_slice %arg11[%158] : memref<2x!tpu.dma_semaphore, #tpu.memory_space<semaphore_mem>> -> memref<1x!tpu.dma_semaphore, #tpu.memory_space<semaphore_mem>>
      %165 = tpu.memref_squeeze %164 : memref<1x!tpu.dma_semaphore, #tpu.memory_space<semaphore_mem>> -> memref<!tpu.dma_semaphore, #tpu.memory_space<semaphore_mem>>
      tpu.enqueue_dma source(%161 : memref<8x384xf32, #tpu.memory_space<any>>) target(%163 : memref<8x384xf32, #tpu.memory_space<vmem>>) target_semaphore(%165 : memref<!tpu.dma_semaphore, #tpu.memory_space<semaphore_mem>>)
    } else {
    }
    %c0 = arith.constant 0 : index
    %c0_11 = arith.constant 0 : index
    %28 = vector.load %arg4[%c0, %c0_11] : memref<8x12xf32, #tpu.memory_space<vmem>>, vector<8x12xf32>
    %c0_12 = arith.constant 0 : index
    %c0_13 = arith.constant 0 : index
    %29 = vector.load %arg5[%c0_12, %c0_13] : memref<8x12xf32, #tpu.memory_space<vmem>>, vector<8x12xf32>
    %c0_14 = arith.constant 0 : index
    %c0_15 = arith.constant 0 : index
    %30 = vector.load %arg6[%c0_14, %c0_15] : memref<8x1xf32, #tpu.memory_space<vmem>>, vector<8x1xf32>
    %c0_16 = arith.constant 0 : index
    %c0_17 = arith.constant 0 : index
    %31 = vector.load %arg7[%c0_16, %c0_17] : memref<8x1xf32, #tpu.memory_space<vmem>>, vector<8x1xf32>
    %32 = vector.extract_strided_slice %28 {offsets = [0, 0], sizes = [8, 1], strides = [1, 1]} : vector<8x12xf32> to vector<8x1xf32>
    %c0_i32_18 = arith.constant 0 : i32
    %c0_i32_19 = arith.constant 0 : i32
    %33 = tpu.memref_slice %arg9[%13, %c0_i32_18, %c0_i32_19] : memref<2x8x384xf32, #tpu.memory_space<vmem>> -> memref<1x8x384xf32, #tpu.memory_space<vmem>>
    %34 = tpu.memref_squeeze %33 : memref<1x8x384xf32, #tpu.memory_space<vmem>> -> memref<8x384xf32, #tpu.memory_space<vmem>>
    %c0_20 = arith.constant 0 : index
    %c118 = arith.constant 118 : index
    %35 = vector.load %34[%c0_20, %c118] : memref<8x384xf32, #tpu.memory_space<vmem>>, vector<8x139xf32>
    %c0_i32_21 = arith.constant 0 : i32
    %c0_i32_22 = arith.constant 0 : i32
    %36 = tpu.memref_slice %arg9[%13, %c0_i32_21, %c0_i32_22] : memref<2x8x384xf32, #tpu.memory_space<vmem>> -> memref<1x8x384xf32, #tpu.memory_space<vmem>>
    %37 = tpu.memref_squeeze %36 : memref<1x8x384xf32, #tpu.memory_space<vmem>> -> memref<8x384xf32, #tpu.memory_space<vmem>>
    %c0_23 = arith.constant 0 : index
    %c129 = arith.constant 129 : index
    %38 = vector.load %37[%c0_23, %c129] : memref<8x384xf32, #tpu.memory_space<vmem>>, vector<8x139xf32>
    %39 = arith.addf %35, %38 : vector<8x139xf32>
    %40 = vector.broadcast %32 : vector<8x1xf32> to vector<8x139xf32>
    %41 = arith.mulf %40, %39 : vector<8x139xf32>
    %42 = vector.extract_strided_slice %28 {offsets = [0, 1], sizes = [8, 1], strides = [1, 1]} : vector<8x12xf32> to vector<8x1xf32>
    %c0_i32_24 = arith.constant 0 : i32
    %c0_i32_25 = arith.constant 0 : i32
    %43 = tpu.memref_slice %arg9[%13, %c0_i32_24, %c0_i32_25] : memref<2x8x384xf32, #tpu.memory_space<vmem>> -> memref<1x8x384xf32, #tpu.memory_space<vmem>>
    %44 = tpu.memref_squeeze %43 : memref<1x8x384xf32, #tpu.memory_space<vmem>> -> memref<8x384xf32, #tpu.memory_space<vmem>>
    %c0_26 = arith.constant 0 : index
    %c119 = arith.constant 119 : index
    %45 = vector.load %44[%c0_26, %c119] : memref<8x384xf32, #tpu.memory_space<vmem>>, vector<8x139xf32>
    %c0_i32_27 = arith.constant 0 : i32
    %c0_i32_28 = arith.constant 0 : i32
    %46 = tpu.memref_slice %arg9[%13, %c0_i32_27, %c0_i32_28] : memref<2x8x384xf32, #tpu.memory_space<vmem>> -> memref<1x8x384xf32, #tpu.memory_space<vmem>>
    %47 = tpu.memref_squeeze %46 : memref<1x8x384xf32, #tpu.memory_space<vmem>> -> memref<8x384xf32, #tpu.memory_space<vmem>>
    %c0_29 = arith.constant 0 : index
    %c128 = arith.constant 128 : index
    %48 = vector.load %47[%c0_29, %c128] : memref<8x384xf32, #tpu.memory_space<vmem>>, vector<8x139xf32>
    %49 = arith.addf %45, %48 : vector<8x139xf32>
    %50 = vector.broadcast %42 : vector<8x1xf32> to vector<8x139xf32>
    %51 = arith.mulf %50, %49 : vector<8x139xf32>
    %52 = arith.addf %41, %51 : vector<8x139xf32>
    %53 = vector.extract_strided_slice %28 {offsets = [0, 2], sizes = [8, 1], strides = [1, 1]} : vector<8x12xf32> to vector<8x1xf32>
    %c0_i32_30 = arith.constant 0 : i32
    %c0_i32_31 = arith.constant 0 : i32
    %54 = tpu.memref_slice %arg9[%13, %c0_i32_30, %c0_i32_31] : memref<2x8x384xf32, #tpu.memory_space<vmem>> -> memref<1x8x384xf32, #tpu.memory_space<vmem>>
    %55 = tpu.memref_squeeze %54 : memref<1x8x384xf32, #tpu.memory_space<vmem>> -> memref<8x384xf32, #tpu.memory_space<vmem>>
    %c0_32 = arith.constant 0 : index
    %c120 = arith.constant 120 : index
    %56 = vector.load %55[%c0_32, %c120] : memref<8x384xf32, #tpu.memory_space<vmem>>, vector<8x139xf32>
    %c0_i32_33 = arith.constant 0 : i32
    %c0_i32_34 = arith.constant 0 : i32
    %57 = tpu.memref_slice %arg9[%13, %c0_i32_33, %c0_i32_34] : memref<2x8x384xf32, #tpu.memory_space<vmem>> -> memref<1x8x384xf32, #tpu.memory_space<vmem>>
    %58 = tpu.memref_squeeze %57 : memref<1x8x384xf32, #tpu.memory_space<vmem>> -> memref<8x384xf32, #tpu.memory_space<vmem>>
    %c0_35 = arith.constant 0 : index
    %c127 = arith.constant 127 : index
    %59 = vector.load %58[%c0_35, %c127] : memref<8x384xf32, #tpu.memory_space<vmem>>, vector<8x139xf32>
    %60 = arith.addf %56, %59 : vector<8x139xf32>
    %61 = vector.broadcast %53 : vector<8x1xf32> to vector<8x139xf32>
    %62 = arith.mulf %61, %60 : vector<8x139xf32>
    %63 = arith.addf %52, %62 : vector<8x139xf32>
    %64 = vector.extract_strided_slice %28 {offsets = [0, 3], sizes = [8, 1], strides = [1, 1]} : vector<8x12xf32> to vector<8x1xf32>
    %c0_i32_36 = arith.constant 0 : i32
    %c0_i32_37 = arith.constant 0 : i32
    %65 = tpu.memref_slice %arg9[%13, %c0_i32_36, %c0_i32_37] : memref<2x8x384xf32, #tpu.memory_space<vmem>> -> memref<1x8x384xf32, #tpu.memory_space<vmem>>
    %66 = tpu.memref_squeeze %65 : memref<1x8x384xf32, #tpu.memory_space<vmem>> -> memref<8x384xf32, #tpu.memory_space<vmem>>
    %c0_38 = arith.constant 0 : index
    %c121 = arith.constant 121 : index
    %67 = vector.load %66[%c0_38, %c121] : memref<8x384xf32, #tpu.memory_space<vmem>>, vector<8x139xf32>
    %c0_i32_39 = arith.constant 0 : i32
    %c0_i32_40 = arith.constant 0 : i32
    %68 = tpu.memref_slice %arg9[%13, %c0_i32_39, %c0_i32_40] : memref<2x8x384xf32, #tpu.memory_space<vmem>> -> memref<1x8x384xf32, #tpu.memory_space<vmem>>
    %69 = tpu.memref_squeeze %68 : memref<1x8x384xf32, #tpu.memory_space<vmem>> -> memref<8x384xf32, #tpu.memory_space<vmem>>
    %c0_41 = arith.constant 0 : index
    %c126 = arith.constant 126 : index
    %70 = vector.load %69[%c0_41, %c126] : memref<8x384xf32, #tpu.memory_space<vmem>>, vector<8x139xf32>
    %71 = arith.addf %67, %70 : vector<8x139xf32>
    %72 = vector.broadcast %64 : vector<8x1xf32> to vector<8x139xf32>
    %73 = arith.mulf %72, %71 : vector<8x139xf32>
    %74 = arith.addf %63, %73 : vector<8x139xf32>
    %75 = vector.extract_strided_slice %28 {offsets = [0, 4], sizes = [8, 1], strides = [1, 1]} : vector<8x12xf32> to vector<8x1xf32>
    %c0_i32_42 = arith.constant 0 : i32
    %c0_i32_43 = arith.constant 0 : i32
    %76 = tpu.memref_slice %arg9[%13, %c0_i32_42, %c0_i32_43] : memref<2x8x384xf32, #tpu.memory_space<vmem>> -> memref<1x8x384xf32, #tpu.memory_space<vmem>>
    %77 = tpu.memref_squeeze %76 : memref<1x8x384xf32, #tpu.memory_space<vmem>> -> memref<8x384xf32, #tpu.memory_space<vmem>>
    %c0_44 = arith.constant 0 : index
    %c122 = arith.constant 122 : index
    %78 = vector.load %77[%c0_44, %c122] : memref<8x384xf32, #tpu.memory_space<vmem>>, vector<8x139xf32>
    %c0_i32_45 = arith.constant 0 : i32
    %c0_i32_46 = arith.constant 0 : i32
    %79 = tpu.memref_slice %arg9[%13, %c0_i32_45, %c0_i32_46] : memref<2x8x384xf32, #tpu.memory_space<vmem>> -> memref<1x8x384xf32, #tpu.memory_space<vmem>>
    %80 = tpu.memref_squeeze %79 : memref<1x8x384xf32, #tpu.memory_space<vmem>> -> memref<8x384xf32, #tpu.memory_space<vmem>>
    %c0_47 = arith.constant 0 : index
    %c125 = arith.constant 125 : index
    %81 = vector.load %80[%c0_47, %c125] : memref<8x384xf32, #tpu.memory_space<vmem>>, vector<8x139xf32>
    %82 = arith.addf %78, %81 : vector<8x139xf32>
    %83 = vector.broadcast %75 : vector<8x1xf32> to vector<8x139xf32>
    %84 = arith.mulf %83, %82 : vector<8x139xf32>
    %85 = arith.addf %74, %84 : vector<8x139xf32>
    %86 = vector.extract_strided_slice %28 {offsets = [0, 5], sizes = [8, 1], strides = [1, 1]} : vector<8x12xf32> to vector<8x1xf32>
    %c0_i32_48 = arith.constant 0 : i32
    %c0_i32_49 = arith.constant 0 : i32
    %87 = tpu.memref_slice %arg9[%13, %c0_i32_48, %c0_i32_49] : memref<2x8x384xf32, #tpu.memory_space<vmem>> -> memref<1x8x384xf32, #tpu.memory_space<vmem>>
    %88 = tpu.memref_squeeze %87 : memref<1x8x384xf32, #tpu.memory_space<vmem>> -> memref<8x384xf32, #tpu.memory_space<vmem>>
    %c0_50 = arith.constant 0 : index
    %c123 = arith.constant 123 : index
    %89 = vector.load %88[%c0_50, %c123] : memref<8x384xf32, #tpu.memory_space<vmem>>, vector<8x139xf32>
    %c0_i32_51 = arith.constant 0 : i32
    %c0_i32_52 = arith.constant 0 : i32
    %90 = tpu.memref_slice %arg9[%13, %c0_i32_51, %c0_i32_52] : memref<2x8x384xf32, #tpu.memory_space<vmem>> -> memref<1x8x384xf32, #tpu.memory_space<vmem>>
    %91 = tpu.memref_squeeze %90 : memref<1x8x384xf32, #tpu.memory_space<vmem>> -> memref<8x384xf32, #tpu.memory_space<vmem>>
    %c0_53 = arith.constant 0 : index
    %c124 = arith.constant 124 : index
    %92 = vector.load %91[%c0_53, %c124] : memref<8x384xf32, #tpu.memory_space<vmem>>, vector<8x139xf32>
    %93 = arith.addf %89, %92 : vector<8x139xf32>
    %94 = vector.broadcast %86 : vector<8x1xf32> to vector<8x139xf32>
    %95 = arith.mulf %94, %93 : vector<8x139xf32>
    %96 = arith.addf %85, %95 : vector<8x139xf32>
    %97 = vector.broadcast %30 : vector<8x1xf32> to vector<8x139xf32>
    %98 = arith.mulf %97, %96 : vector<8x139xf32>
    %99 = math.sin %98 : vector<8x139xf32>
    %100 = arith.mulf %99, %99 : vector<8x139xf32>
    %101 = vector.broadcast %31 : vector<8x1xf32> to vector<8x139xf32>
    %102 = arith.mulf %101, %100 : vector<8x139xf32>
    %103 = arith.addf %96, %102 : vector<8x139xf32>
    %c0_i32_54 = arith.constant 0 : i32
    %104 = arith.cmpi eq, %1, %c0_i32_54 : i32
    %c1_i32_55 = arith.constant 1 : i32
    %105 = arith.addi %1, %c1_i32_55 : i32
    %c128_i32_56 = arith.constant 128 : i32
    %106 = arith.muli %105, %c128_i32_56 : i32
    %c6_i32 = arith.constant 6 : i32
    %107 = arith.addi %106, %c6_i32 : i32
    %c16_i32 = arith.constant 16 : i32
    %108 = arith.cmpi sgt, %107, %c16_i32 : i32
    %109 = arith.ori %104, %108 : i1
    %true = arith.constant true
    %110 = arith.xori %109, %true : i1
    %111 = arith.extui %110 : i1 to i32
    %c0_i32_57 = arith.constant 0 : i32
    %112 = arith.cmpi ne, %111, %c0_i32_57 : i32
    scf.if %112 {
      %c0_74 = arith.constant 0 : index
      %c0_75 = arith.constant 0 : index
      %157 = vector.load %arg10[%c0_74, %c0_75] : memref<8x256xf32, #tpu.memory_space<vmem>>, vector<8x139xf32>
      tpu.vector_store %arg10[%c0_74, %c0_75], %103 {strides = array<i32>} : memref<8x256xf32, #tpu.memory_space<vmem>>, vector<8x139xf32>,
    } else {
    }
    %113 = arith.extui %109 : i1 to i32
    %c0_i32_58 = arith.constant 0 : i32
    %114 = arith.cmpi ne, %113, %c0_i32_58 : i32
    scf.if %114 {
      %c128_i32_74 = arith.constant 128 : i32
      %157 = arith.muli %1, %c128_i32_74 : i32
      %c5_i32 = arith.constant 5 : i32
      %158 = arith.subi %157, %c5_i32 : i32
      %159 = tpu.iota {dimensions = array<i32: 1>} : vector<8x139xi32>
      %160 = vector.broadcast %158 : i32 to vector<8x139xi32>
      %161 = arith.addi %160, %159 : vector<8x139xi32>
      %c0_i32_75 = arith.constant 0 : i32
      %162 = vector.broadcast %c0_i32_75 : i32 to vector<8x139xi32>
      %163 = arith.cmpi sge, %161, %162 : vector<8x139xi32>
      %c16_i32_76 = arith.constant 16 : i32
      %164 = vector.broadcast %c16_i32_76 : i32 to vector<8x139xi32>
      %165 = arith.cmpi slt, %161, %164 : vector<8x139xi32>
      %166 = arith.andi %163, %165 : vector<8x139xi1>
      %cst = arith.constant 0.000000e+00 : f32
      %167 = vector.broadcast %cst : f32 to vector<8x139xf32>
      %168 = arith.select %166, %103, %167 : vector<8x139xi1>, vector<8x139xf32>
      %c0_77 = arith.constant 0 : index
      %c0_78 = arith.constant 0 : index
      %169 = vector.load %arg10[%c0_77, %c0_78] : memref<8x256xf32, #tpu.memory_space<vmem>>, vector<8x139xf32>
      tpu.vector_store %arg10[%c0_77, %c0_78], %168 {strides = array<i32>} : memref<8x256xf32, #tpu.memory_space<vmem>>, vector<8x139xf32>,
    } else {
    }
    %115 = vector.extract_strided_slice %29 {offsets = [0, 0], sizes = [8, 1], strides = [1, 1]} : vector<8x12xf32> to vector<8x1xf32>
    %c0_59 = arith.constant 0 : index
    %c0_60 = arith.constant 0 : index
    %116 = vector.load %arg10[%c0_59, %c0_60] : memref<8x256xf32, #tpu.memory_space<vmem>>, vector<8x128xf32>
    %c0_61 = arith.constant 0 : index
    %c11 = arith.constant 11 : index
    %117 = vector.load %arg10[%c0_61, %c11] : memref<8x256xf32, #tpu.memory_space<vmem>>, vector<8x128xf32>
    %118 = arith.addf %116, %117 : vector<8x128xf32>
    %119 = vector.broadcast %115 : vector<8x1xf32> to vector<8x128xf32>
    %120 = arith.mulf %119, %118 : vector<8x128xf32>
    %121 = vector.extract_strided_slice %29 {offsets = [0, 1], sizes = [8, 1], strides = [1, 1]} : vector<8x12xf32> to vector<8x1xf32>
    %c0_62 = arith.constant 0 : index
    %c1 = arith.constant 1 : index
    %122 = vector.load %arg10[%c0_62, %c1] : memref<8x256xf32, #tpu.memory_space<vmem>>, vector<8x128xf32>
    %c0_63 = arith.constant 0 : index
    %c10 = arith.constant 10 : index
    %123 = vector.load %arg10[%c0_63, %c10] : memref<8x256xf32, #tpu.memory_space<vmem>>, vector<8x128xf32>
    %124 = arith.addf %122, %123 : vector<8x128xf32>
    %125 = vector.broadcast %121 : vector<8x1xf32> to vector<8x128xf32>
    %126 = arith.mulf %125, %124 : vector<8x128xf32>
    %127 = arith.addf %120, %126 : vector<8x128xf32>
    %128 = vector.extract_strided_slice %29 {offsets = [0, 2], sizes = [8, 1], strides = [1, 1]} : vector<8x12xf32> to vector<8x1xf32>
    %c0_64 = arith.constant 0 : index
    %c2 = arith.constant 2 : index
    %129 = vector.load %arg10[%c0_64, %c2] : memref<8x256xf32, #tpu.memory_space<vmem>>, vector<8x128xf32>
    %c0_65 = arith.constant 0 : index
    %c9 = arith.constant 9 : index
    %130 = vector.load %arg10[%c0_65, %c9] : memref<8x256xf32, #tpu.memory_space<vmem>>, vector<8x128xf32>
    %131 = arith.addf %129, %130 : vector<8x128xf32>
    %132 = vector.broadcast %128 : vector<8x1xf32> to vector<8x128xf32>
    %133 = arith.mulf %132, %131 : vector<8x128xf32>
    %134 = arith.addf %127, %133 : vector<8x128xf32>
    %135 = vector.extract_strided_slice %29 {offsets = [0, 3], sizes = [8, 1], strides = [1, 1]} : vector<8x12xf32> to vector<8x1xf32>
    %c0_66 = arith.constant 0 : index
    %c3 = arith.constant 3 : index
    %136 = vector.load %arg10[%c0_66, %c3] : memref<8x256xf32, #tpu.memory_space<vmem>>, vector<8x128xf32>
    %c0_67 = arith.constant 0 : index
    %c8 = arith.constant 8 : index
    %137 = vector.load %arg10[%c0_67, %c8] : memref<8x256xf32, #tpu.memory_space<vmem>>, vector<8x128xf32>
    %138 = arith.addf %136, %137 : vector<8x128xf32>
    %139 = vector.broadcast %135 : vector<8x1xf32> to vector<8x128xf32>
    %140 = arith.mulf %139, %138 : vector<8x128xf32>
    %141 = arith.addf %134, %140 : vector<8x128xf32>
    %142 = vector.extract_strided_slice %29 {offsets = [0, 4], sizes = [8, 1], strides = [1, 1]} : vector<8x12xf32> to vector<8x1xf32>
    %c0_68 = arith.constant 0 : index
    %c4 = arith.constant 4 : index
    %143 = vector.load %arg10[%c0_68, %c4] : memref<8x256xf32, #tpu.memory_space<vmem>>, vector<8x128xf32>
    %c0_69 = arith.constant 0 : index
    %c7 = arith.constant 7 : index
    %144 = vector.load %arg10[%c0_69, %c7] : memref<8x256xf32, #tpu.memory_space<vmem>>, vector<8x128xf32>
    %145 = arith.addf %143, %144 : vector<8x128xf32>
    %146 = vector.broadcast %142 : vector<8x1xf32> to vector<8x128xf32>
    %147 = arith.mulf %146, %145 : vector<8x128xf32>
    %148 = arith.addf %141, %147 : vector<8x128xf32>
    %149 = vector.extract_strided_slice %29 {offsets = [0, 5], sizes = [8, 1], strides = [1, 1]} : vector<8x12xf32> to vector<8x1xf32>
    %c0_70 = arith.constant 0 : index
    %c5 = arith.constant 5 : index
    %150 = vector.load %arg10[%c0_70, %c5] : memref<8x256xf32, #tpu.memory_space<vmem>>, vector<8x128xf32>
    %c0_71 = arith.constant 0 : index
    %c6 = arith.constant 6 : index
    %151 = vector.load %arg10[%c0_71, %c6] : memref<8x256xf32, #tpu.memory_space<vmem>>, vector<8x128xf32>
    %152 = arith.addf %150, %151 : vector<8x128xf32>
    %153 = vector.broadcast %149 : vector<8x1xf32> to vector<8x128xf32>
    %154 = arith.mulf %153, %152 : vector<8x128xf32>
    %155 = arith.addf %148, %154 : vector<8x128xf32>
    %c0_72 = arith.constant 0 : index
    %c0_73 = arith.constant 0 : index
    %156 = vector.load %arg8[%c0_72, %c0_73] : memref<8x128xf32, #tpu.memory_space<vmem>>, vector<8x128xf32>
    tpu.vector_store %arg8[%c0_72, %c0_73], %155 {strides = array<i32>} : memref<8x128xf32, #tpu.memory_space<vmem>>, vector<8x128xf32>,
    return
  }
  func.func @transform_1(%arg0: i32, %arg1: i32, %arg2: i32) -> (i32, i32) {
    %c0_i32 = arith.constant 0 : i32
    %c0_i32_0 = arith.constant 0 : i32
    return %arg0, %c0_i32 : i32, i32
  }
  func.func @transform_2(%arg0: i32, %arg1: i32, %arg2: i32) -> (i32, i32) {
    %c0_i32 = arith.constant 0 : i32
    %c0_i32_0 = arith.constant 0 : i32
    return %arg0, %c0_i32 : i32, i32
  }
  func.func @transform_3(%arg0: i32, %arg1: i32, %arg2: i32) -> (i32, i32) {
    %c0_i32 = arith.constant 0 : i32
    %c0_i32_0 = arith.constant 0 : i32
    return %arg0, %c0_i32 : i32, i32
  }
  func.func @transform_4(%arg0: i32, %arg1: i32, %arg2: i32) -> (i32, i32) {
    %c0_i32 = arith.constant 0 : i32
    %c0_i32_0 = arith.constant 0 : i32
    return %arg0, %c0_i32 : i32, i32
  }
  func.func @transform_5(%arg0: i32, %arg1: i32, %arg2: i32) -> (i32, i32) {
    %c1_i32 = arith.constant 1 : i32
    %0 = arith.muli %arg1, %c1_i32 : i32
    %1 = arith.addi %0, %arg2 : i32
    %c0_i32 = arith.constant 0 : i32
    return %arg0, %1 : i32, i32
  }
}

</mosaic_0001>

<bundles_post_ra>
// kernel: tpu_custom_call.1
= control target key start
LH: loop header
LB: loop body
LE: loop exit
PB: predicated region body
PF: predicated region fallthrough
CT: control target
= control target key end

     0   :  { %10 = vsyncpa [#allocation6], 0  ;;  %s1015_s18 = smov [#allocation2]   ;;  %s1328_s0 = inlined_call_operand.hbm [shape: f32[8,384], index: 0, kind: input, shape index: {}]   ;;  %s1329_s1 = inlined_call_operand.vmem [shape: f32[8,12], index: 1, kind: input, shape index: {}]   ;;  %s1330_s2 = inlined_call_operand.vmem [shape: f32[8,12], index: 2, kind: input, shape index: {}]   ;;  %s1331_s3 = inlined_call_operand.vmem [shape: f32[8,1], index: 3, kind: input, shape index: {}]   ;;  %s1332_s4 = inlined_call_operand.vmem [shape: f32[8,1], index: 4, kind: input, shape index: {}]   ;;  %s1333_s5 = inlined_call_operand.hbm [shape: f32[8,128], index: 5, kind: output, shape index: {}]  }
   0x1   :  { %s54_s19 = sshll.u32 %s1015_s18, 4  ;;  %s55_s19 = int_to_ptr.vmem [resolvable:$true] %s54_s19 }
   0x2   :  { %s979_s20 = scalar_lea.vmem %s55_s19, 384  ;;  %s983_s21 = scalar_lea.vmem %s55_s19, 768 }
   0x3   :  { %p980_p0 = scmp.ne.s32.totalorder %s55_s19, %s979_s20  ;;  %p984_p1 = scmp.lt.s32.totalorder %s55_s19, %s55_s19 }
   0x4   :  { %p985_p2 = scmp.lt.s32.totalorder %s983_s21, %s979_s20 }
   0x6   :  { %p986_p3 = por %p985_p2, %p984_p1 }
   0x8   :  { %p987_p4 = pnand %p986_p3, %p980_p0 }
   0xa   :  { %990 = shalt.err (!%p987_p4)  }
   0xb   :  { %57 = dma.hbm_to_vmem [thread:$0]  %s1328_s0, 384, %s55_s19, [#allocation4] }
   0xc   :  { %1011 = dma.done.wait [#allocation4], 384 }
   0xd   :  { %1012 = vsyncadd [#allocation4], 4294966912  ;;  %vm695_vm0 = vcmask 89088   ;;  %v1016_v0 = vmov 0.0   ;;  %v1017_v1 = vmov 1   ;;  %v1018_v2 = vmov 2  }
   0xe   :  { %696 = vst.msk [vmem:[#allocation3 + $0x8] sm:$0xff] %vm695_vm0, %v1016_v0  ;;  %949 = vset.pattern.permute.xlu0 %v1017_v1  ;;  %950 = vset.pattern.permute.xlu1 %v1018_v2  ;;  %v1073_v3 = vld [vmem:[#allocation2 + $0x10] sm:$0xff]  ;;  %v98_v4 = vld [vmem:[%s1329_s1] sm:$0xff]  ;;  %s1019_s26 = smov 119   ;;  %v1080_v5 = vld [vmem:[#allocation2 + $0x8] sm:$0xff]  ;;  %v1020_v7 = vmov 0  }
   0xf   :  { %129 = vrot.lane.b32.xlu1 %v1073_v3, %s1019_s26  ;;  %140 = vperm.xlu0 %949, %v98_v4   ;;  %v1084_v6 = vld [vmem:[#allocation2] sm:$0xff]  ;;  %s1021_s0 = smov 121   ;;  %v1022_v8 = vmov 3   ;;  %s1023_s1 = smov 123   ;;  %v1024_v9 = vmov 4   ;;  %v1026_v10 = vmov 5  }
  0x10   :  { %s1025_s27 = smov 125   ;;  %s1027_s28 = smov 127   ;;  %v100_v11 = vld [vmem:[%s1331_s3] sm:$0xff]  ;;  %vm131_vm1 = vcmask 973824   ;;  %vm171_vm2 = vcmask 990208   ;;  %vm211_vm3 = vcmask 1006592  }
  0x11   :  { %s1028_s29 = smov 117   ;;  %s1029_s3 = smov 126   ;;  %vm236_vm4 = vcmask 1022976   ;;  %vm155_vm5 = vcmask 1039360   ;;  %vm111_vm6 = vcmask 957440   ;;  %vm196_vm7 = vcmask 1031168  }
  0x12   :  { %s1030_s7 = smov 124   ;;  %vm275_vm8 = vcmask 1014784  }
  0x13   :  { %181 = vperm.xlu1 %950, %v98_v4   ;;  %127 = vrot.lane.b32.xlu0 %v1080_v5, %s1019_s26 }
  0x14   :  { %955 = vset.pattern.permute.xlu0 %v1020_v7 }
  0x17   :  { %167 = vrot.lane.b32.xlu1 %v1080_v5, %s1021_s0  ;;  %165 = vrot.lane.b32.xlu0 %v1084_v6, %s1021_s0 }
  0x18   :  { %951 = vset.pattern.permute.xlu1 %v1022_v8 }
  0x1b   :  { %221 = vperm.xlu1 %951, %v98_v4   ;;  %169 = vrot.lane.b32.xlu0 %v1073_v3, %s1021_s0 }
  0x1f   :  { %207 = vrot.lane.b32.xlu1 %v1080_v5, %s1023_s1  ;;  %205 = vrot.lane.b32.xlu0 %v1084_v6, %s1023_s1 }
  0x20   :  { %952 = vset.pattern.permute.xlu1 %v1024_v9 }
  0x23   :  { %260 = vperm.xlu1 %952, %v98_v4   ;;  %209 = vrot.lane.b32.xlu0 %v1073_v3, %s1023_s1 }
  0x27   :  { %247 = vrot.lane.b32.xlu1 %v1080_v5, %s1025_s27  ;;  %245 = vrot.lane.b32.xlu0 %v1084_v6, %s1025_s27 }
  0x28   :  { %953 = vset.pattern.permute.xlu1 %v1026_v10 }
  0x2b   :  { %299 = vperm.xlu1 %953, %v98_v4   ;;  %249 = vrot.lane.b32.xlu0 %v1073_v3, %s1025_s27 }
  0x2f   :  { %286 = vrot.lane.b32.xlu1 %v1080_v5, %s1027_s28  ;;  %284 = vrot.lane.b32.xlu0 %v1084_v6, %s1027_s28 }
  0x30   :  { %954 = vset.pattern.permute.xlu1 %v1020_v7 }
  0x33   :  { %288 = vrot.lane.b32.xlu0 %v1073_v3, %s1027_s28  ;;  %121 = vperm.xlu1 %954, %v98_v4  }
  0x37   :  { %107 = vrot.lane.b32.xlu0 %v1080_v5, %s1028_s29  ;;  %109 = vrot.lane.b32.xlu1 %v1073_v3, %s1028_s29 }
  0x3b   :  { %324 = vperm.xlu0 %955, %v100_v11  }
  0x3f   :  { %956 = vset.pattern.permute.xlu0 %v1017_v1 }
  0x81   :  { %v130_v12 = vpop.permute.xlu1 %129 }
  0x82   :  { %v138_v23 = vadd.f32 %v130_v12, %v1073_v3 }
  0x8a   :  { %v141_v13 = vpop.permute.xlu0 %140 }
  0x8b   :  { %v145_v26 = vmul.f32 %v141_v13, %v138_v23 }
  0x8e   :  { %v182_v14 = vpop.permute.xlu1 %181  ;;  %v128_v15 = vpop.permute.xlu0 %127 }
  0x8f   :  { %v132_v16 = vsel %vm131_vm1, %v128_v15, %v130_v12  ;;  %v136_v17 = vadd.f32 %v128_v15, %v1084_v6 }
  0x90   :  { %v137_v18 = vadd.f32 %v132_v16, %v1080_v5 }
  0x91   :  { %v143_v19 = vmul.f32 %v141_v13, %v136_v17 }
  0x92   :  { %v168_v20 = vpop.permute.xlu1 %167  ;;  %v166_v21 = vpop.permute.xlu0 %165  ;;  %v144_v22 = vmul.f32 %v141_v13, %v137_v18 }
  0x93   :  { %v172_v24 = vsel %vm171_vm2, %v166_v21, %v168_v20  ;;  %149 = vrot.lane.b32.xlu0 %v143_v19, %s1027_s28 }
  0x94   :  { %v177_v25 = vadd.f32 %v172_v24, %v1084_v6  ;;  %151 = vrot.lane.b32.xlu1 %v144_v22, %s1027_s28 }
  0x96   :  { %v222_v27 = vpop.permute.xlu1 %221  ;;  %v170_v28 = vpop.permute.xlu0 %169  ;;  %v184_v29 = vmul.f32 %v182_v14, %v177_v25 }
  0x97   :  { %v173_v30 = vsel %vm171_vm2, %v168_v20, %v170_v28  ;;  %v179_v31 = vadd.f32 %v170_v28, %v1073_v3  ;;  %153 = vrot.lane.b32.xlu0 %v145_v26, %s1027_s28 }
  0x98   :  { %v178_v32 = vadd.f32 %v173_v30, %v1080_v5  ;;  %190 = vrot.lane.b32.xlu1 %v184_v29, %s1029_s3 }
  0x99   :  { %v186_v33 = vmul.f32 %v182_v14, %v179_v31 }
  0x9a   :  { %v208_v34 = vpop.permute.xlu1 %207  ;;  %v206_v35 = vpop.permute.xlu0 %205  ;;  %v185_v36 = vmul.f32 %v182_v14, %v178_v32  ;;  %v101_v14 = vld [vmem:[%s1332_s4] sm:$0xff]  ;;  %s1037_s4 = smov 10  }
  0x9b   :  { %v212_v37 = vsel %vm211_vm3, %v206_v35, %v208_v34 }
  0x9c   :  { %v217_v38 = vadd.f32 %v212_v37, %v1084_v6  ;;  %194 = vrot.lane.b32.xlu1 %v186_v33, %s1029_s3  ;;  %192 = vrot.lane.b32.xlu0 %v185_v36, %s1029_s3 }
  0x9e   :  { %v261_v39 = vpop.permute.xlu1 %260  ;;  %v210_v40 = vpop.permute.xlu0 %209  ;;  %v224_v41 = vmul.f32 %v222_v27, %v217_v38 }
  0x9f   :  { %v213_v42 = vsel %vm211_vm3, %v208_v34, %v210_v40  ;;  %v219_v43 = vadd.f32 %v210_v40, %v1073_v3 }
  0xa0   :  { %v218_v44 = vadd.f32 %v213_v42, %v1080_v5  ;;  %230 = vrot.lane.b32.xlu0 %v224_v41, %s1025_s27 }
  0xa1   :  { %v226_v45 = vmul.f32 %v222_v27, %v219_v43 }
  0xa2   :  { %v248_v46 = vpop.permute.xlu1 %247  ;;  %v246_v47 = vpop.permute.xlu0 %245  ;;  %v225_v48 = vmul.f32 %v222_v27, %v218_v44 }
  0xa3   :  { %v251_v49 = vsel %vm236_vm4, %v246_v47, %v248_v46 }
  0xa4   :  { %v256_v50 = vadd.f32 %v251_v49, %v1084_v6  ;;  %234 = vrot.lane.b32.xlu0 %v226_v45, %s1025_s27  ;;  %232 = vrot.lane.b32.xlu1 %v225_v48, %s1025_s27 }
  0xa6   :  { %v300_v51 = vpop.permute.xlu1 %299  ;;  %v250_v52 = vpop.permute.xlu0 %249  ;;  %v263_v53 = vmul.f32 %v261_v39, %v256_v50 }
  0xa7   :  { %v252_v54 = vsel %vm236_vm4, %v248_v46, %v250_v52  ;;  %v258_v55 = vadd.f32 %v250_v52, %v1073_v3 }
  0xa8   :  { %v257_v56 = vadd.f32 %v252_v54, %v1080_v5  ;;  %269 = vrot.lane.b32.xlu1 %v263_v53, %s1030_s7 }
  0xa9   :  { %v265_v57 = vmul.f32 %v261_v39, %v258_v55 }
  0xaa   :  { %v287_v58 = vpop.permute.xlu1 %286  ;;  %v285_v59 = vpop.permute.xlu0 %284  ;;  %v264_v60 = vmul.f32 %v261_v39, %v257_v56 }
  0xab   :  { %v290_v61 = vsel %vm155_vm5, %v285_v59, %v287_v58 }
  0xac   :  { %v295_v62 = vadd.f32 %v290_v61, %v1084_v6  ;;  %273 = vrot.lane.b32.xlu1 %v265_v57, %s1030_s7  ;;  %271 = vrot.lane.b32.xlu0 %v264_v60, %s1030_s7 }
  0xae   :  { %v289_v63 = vpop.permute.xlu0 %288  ;;  %v302_v0 = vmul.f32 %v300_v51, %v295_v62  ;;  %v122_v16 = vpop.permute.xlu1 %121 }
  0xaf   :  { %v291_v1 = vsel %vm155_vm5, %v287_v58, %v289_v63  ;;  %v297_v4 = vadd.f32 %v289_v63, %v1073_v3 }
  0xb0   :  { %v296_v11 = vadd.f32 %v291_v1, %v1080_v5  ;;  %308 = vrot.lane.b32.xlu1 %v302_v0, %s1023_s1 }
  0xb1   :  { %v304_v12 = vmul.f32 %v300_v51, %v297_v4 }
  0xb2   :  { %v303_v13 = vmul.f32 %v300_v51, %v296_v11  ;;  %v108_v15 = vpop.permute.xlu0 %107  ;;  %v110_v18 = vpop.permute.xlu1 %109 }
  0xb3   :  { %312 = vrot.lane.b32.xlu0 %v304_v12, %s1023_s1  ;;  %v112_v26 = vsel %vm111_vm6, %v108_v15, %v110_v18  ;;  %v116_v27 = vadd.f32 %v108_v15, %v1084_v6 }
  0xb4   :  { %310 = vrot.lane.b32.xlu1 %v303_v13, %s1023_s1  ;;  %v117_v28 = vadd.f32 %v112_v26, %v1080_v5 }
  0xb5   :  { %v124_v33 = vmul.f32 %v122_v16, %v116_v27 }
  0xb6   :  { %v325_v17 = vpop.permute.xlu0 %324  ;;  %v125_v34 = vmul.f32 %v122_v16, %v117_v28 }
  0xb8   :  { %647 = vperm.xlu1 %954, %v101_v14  }
 0x105   :  { %v150_v3 = vpop.permute.xlu0 %149 }
 0x106   :  { %v152_v19 = vpop.permute.xlu1 %151 }
 0x107   :  { %v156_v31 = vsel %vm155_vm5, %v150_v3, %v152_v19 }
 0x108   :  { %v161_v38 = vadd.f32 %v156_v31, %v124_v33 }
 0x109   :  { %v154_v20 = vpop.permute.xlu0 %153 }
 0x10a   :  { %v191_v21 = vpop.permute.xlu1 %190  ;;  %v157_v32 = vsel %vm155_vm5, %v152_v19, %v154_v20 }
 0x10b   :  { %v162_v39 = vadd.f32 %v157_v32, %v125_v34 }
 0x10e   :  { %v193_v22 = vpop.permute.xlu0 %192  ;;  %v195_v23 = vpop.permute.xlu1 %194 }
 0x10f   :  { %v197_v36 = vsel %vm196_vm7, %v191_v21, %v193_v22  ;;  %v198_v37 = vsel %vm196_vm7, %v193_v22, %v195_v23  ;;  %v1031_v23 = vmov 2102212464  }
 0x110   :  { %v202_v41 = vadd.f32 %v197_v36, %v161_v38  ;;  %v203_v42 = vadd.f32 %v198_v37, %v162_v39  ;;  %v1035_v37 = vmov 2475754826  }
 0x112   :  { %v231_v24 = vpop.permute.xlu0 %230 }
 0x116   :  { %v233_v25 = vpop.permute.xlu1 %232  ;;  %v235_v30 = vpop.permute.xlu0 %234 }
 0x117   :  { %v237_v5 = vsel %vm236_vm4, %v231_v24, %v233_v25  ;;  %v238_v40 = vsel %vm236_vm4, %v233_v25, %v235_v30  ;;  %v1032_v25 = vmov 920167782  }
 0x118   :  { %v242_v46 = vadd.f32 %v237_v5, %v202_v41  ;;  %v243_v47 = vadd.f32 %v238_v40, %v203_v42  ;;  %v1036_v40 = vmov 2131351028  }
 0x11a   :  { %v270_v29 = vpop.permute.xlu1 %269 }
 0x11e   :  { %v274_v35 = vpop.permute.xlu1 %273  ;;  %v272_v6 = vpop.permute.xlu0 %271 }
 0x11f   :  { %v276_v44 = vsel %vm275_vm8, %v270_v29, %v272_v6  ;;  %v277_v45 = vsel %vm275_vm8, %v272_v6, %v274_v35  ;;  %v1033_v29 = vmov 1326507024   ;;  %v1034_v35 = vmov 683565275  }
 0x120   :  { %v281_v49 = vadd.f32 %v276_v44, %v242_v46  ;;  %v282_v50 = vadd.f32 %v277_v45, %v243_v47 }
 0x122   :  { %v309_v43 = vpop.permute.xlu1 %308 }
 0x125   :  { %v313_v48 = vpop.permute.xlu0 %312 }
 0x126   :  { %v311_v51 = vpop.permute.xlu1 %310 }
 0x127   :  { %v314_v52 = vsel %vm211_vm3, %v309_v43, %v311_v51  ;;  %v315_v53 = vsel %vm211_vm3, %v311_v51, %v313_v48 }
 0x128   :  { %v1177_v54 = vadd.f32 %v314_v52, %v281_v49  ;;  %v1179_v55 = vadd.f32 %v315_v53, %v282_v50 }
 0x12a   :  { %v1182_v56 = vmul.f32 %v325_v17, %v1177_v54  ;;  %v1185_v57 = vmul.f32 %v325_v17, %v1179_v55 }
 0x12c   :  { %v333_v58 = vand.u32 2139095040, %v1182_v56  ;;  %v437_v59 = vand.u32 2139095040, %v1185_v57  ;;  %v330_v60 = vand.u32 2147483647, %v1182_v56  ;;  %v434_v4 = vand.u32 2147483647, %v1185_v57 }
 0x12e   :  { %v334_v61 = vshrl.u32 %v333_v58, 23  ;;  %v438_v62 = vshrl.u32 %v437_v59, 23  ;;  %v337_v1 = vand.u32 8388607, %v330_v60  ;;  %v1195_v14 = vand.u32 8388607, %v434_v4 }
 0x130   :  { %v903_v63 = vadd.s32 4294967169, %v334_v61  ;;  %v907_v0 = vadd.s32 4294967169, %v438_v62  ;;  %v338_v13 = vor.u32 8388608, %v337_v1  ;;  %v442_v22 = vor.u32 8388608, %v1195_v14 }
 0x132   :  { %v340_v11 = vadd.s32 1, %v903_v63  ;;  %v444_v12 = vadd.s32 1, %v907_v0  ;;  %v1199_v21 = vshll.u32 %v338_v13, 8 }
 0x134   :  { %vm341_vm9 = vcmp.gt.s32.totalorder %v340_v11, 0  ;;  %vm445_vm10 = vcmp.gt.s32.totalorder %v444_v12, 0 }
 0x135   :  { %v342_v15 = vsel %vm341_vm9, %v340_v11, 0  ;;  %v446_v16 = vsel %vm445_vm10, %v444_v12, 0 }
 0x136   :  { %v343_v17 = vshrl.u32 %v342_v15, 5  ;;  %v344_v18 = vand.u32 31, %v342_v15  ;;  %v448_v3 = vand.u32 31, %v446_v16  ;;  %v1197_v20 = vshrl.u32 %v446_v16, 5 }
 0x138   :  { %v345_v19 = vsub.s32 32, %v344_v18  ;;  %v356_v24 = vshll.u32 %v1031_v23, %v344_v18  ;;  %v359_v26 = vshll.u32 %v1032_v25, %v344_v18  ;;  %vm365_vm11 = vcmp.lt.s32.totalorder %v343_v17, 4 }
 0x139   :  { %v449_v27 = vsub.s32 32, %v448_v3  ;;  %v460_v31 = vshll.u32 %v1031_v23, %v448_v3  ;;  %v463_v32 = vshll.u32 %v1032_v25, %v448_v3  ;;  %v347_v36 = vshll.u32 %v1034_v35, %v344_v18 }
 0x13a   :  { %v357_v28 = vshrl.u32 %v1032_v25, %v345_v19  ;;  %v360_v30 = vshrl.u32 %v1033_v29, %v345_v19  ;;  %v348_v38 = vshrl.u32 %v1035_v37, %v345_v19  ;;  %v350_v5 = vshll.u32 %v1035_v37, %v344_v18 }
 0x13b   :  { %v461_v33 = vshrl.u32 %v1032_v25, %v449_v27  ;;  %v464_v34 = vshrl.u32 %v1033_v29, %v449_v27  ;;  %v351_v41 = vshrl.u32 %v1036_v40, %v345_v19  ;;  %vm469_vm12 = vcmp.lt.s32.totalorder %v1197_v20, 4 }
 0x13c   :  { %v358_v39 = vor.u32 %v357_v28, %v356_v24  ;;  %v361_v6 = vor.u32 %v360_v30, %v359_v26  ;;  %v349_v42 = vor.u32 %v348_v38, %v347_v36  ;;  %v353_v43 = vshll.u32 %v1036_v40, %v344_v18 }
 0x13d   :  { %v354_v44 = vshrl.u32 %v1031_v23, %v345_v19  ;;  %v346_v47 = vshrl.u32 %v1034_v35, %v345_v19  ;;  %v352_v48 = vor.u32 %v351_v41, %v350_v5  ;;  %v462_v49 = vor.u32 %v461_v33, %v460_v31 }
 0x13e   :  { %v371_v45 = vsel %vm365_vm11, %v358_v39, 920167782  ;;  %v375_v46 = vsel %vm365_vm11, %v361_v6, 1326507024  ;;  %v465_v50 = vor.u32 %v464_v34, %v463_v32  ;;  %vm362_vm13 = vcmp.lt.s32.totalorder %v343_v17, 1 }
 0x13f   :  { %v355_v51 = vor.u32 %v354_v44, %v353_v43  ;;  %vm363_vm14 = vcmp.lt.s32.totalorder %v343_v17, 2  ;;  %vm364_vm15 = vcmp.lt.s32.totalorder %v343_v17, 3  ;;  %v366_v52 = vsel %vm362_vm13, %v346_v47, %v349_v42 }
 0x140   :  { %v370_v53 = vsel %vm362_vm13, %v349_v42, %v352_v48  ;;  %v376_v62 = vsel %vm364_vm15, %v358_v39, %v375_v46  ;;  %v451_v11 = vshll.u32 %v1034_v35, %v448_v3  ;;  %v452_v15 = vshrl.u32 %v1035_v37, %v449_v27 }
 0x141   :  { %v367_v58 = vsel %vm365_vm11, %v355_v51, 2102212464  ;;  %v372_v59 = vsel %vm364_vm15, %v355_v51, %v371_v45  ;;  %v374_v61 = vsel %vm362_vm13, %v352_v48, %v355_v51  ;;  %v479_v16 = vsel %vm469_vm12, %v465_v50, 1326507024 }
 0x142   :  { %v368_v63 = vsel %vm364_vm15, %v352_v48, %v367_v58  ;;  %v373_v0 = vsel %vm363_vm14, %v370_v53, %v372_v59  ;;  %v377_v1 = vsel %vm363_vm14, %v374_v61, %v376_v62  ;;  %v454_v19 = vshll.u32 %v1035_v37, %v448_v3 }
 0x143   :  { %v369_v12 = vsel %vm363_vm14, %v366_v52, %v368_v63  ;;  %v1207_v13 = vmul.u32.u64.low %v1199_v21, %v377_v1  ;;  %v1208_v14 = vmul.u32.u64.high %v1199_v21, %v377_v1, %v1207_v13  ;;  %v453_v24 = vor.u32 %v452_v15, %v451_v11 }
 0x144   :  { %v1213_v18 = vmul.u32.u64.low %v1199_v21, %v373_v0  ;;  %v1214_v17 = vmul.u32.u64.high %v1199_v21, %v373_v0, %v1213_v18  ;;  %v455_v25 = vshrl.u32 %v1036_v40, %v449_v27  ;;  %v457_v26 = vshll.u32 %v1036_v40, %v448_v3 }
 0x145   :  { %v458_v28 = vshrl.u32 %v1031_v23, %v449_v27  ;;  %v475_v29 = vsel %vm469_vm12, %v462_v49, 920167782  ;;  %v385_v30 = vmul.u32 %v1199_v21, %v369_v12  ;;  %v450_v31 = vshrl.u32 %v1034_v35, %v449_v27 }
 0x146   :  { %v482_v32 = vshll.u32 %v442_v22, 8  ;;  %vm387_vm0 = vc.u32 %v1208_v14, %v1213_v18  ;;  %v456_v33 = vor.u32 %v455_v25, %v454_v19  ;;  %vm468_vm9 = vcmp.lt.s32.totalorder %v1197_v20, 3 }
 0x147   :  { %v459_v34 = vor.u32 %v458_v28, %v457_v26  ;;  %v388_v36 = vadd.s32 1, %v1214_v17  ;;  %vm466_vm10 = vcmp.lt.s32.totalorder %v1197_v20, 1  ;;  %vm467_vm11 = vcmp.lt.s32.totalorder %v1197_v20, 2 }
 0x148   :  { %v480_v3 = vsel %vm468_vm9, %v462_v49, %v479_v16  ;;  %v474_v37 = vsel %vm466_vm10, %v453_v24, %v456_v33  ;;  %v470_v35 = vsel %vm466_vm10, %v450_v31, %v453_v24  ;;  %v386_v12 = vadd.s32 %v1213_v18, %v1208_v14 }
 0x149   :  { %v471_v23 = vsel %vm469_vm12, %v459_v34, 2102212464  ;;  %v476_v21 = vsel %vm468_vm9, %v459_v34, %v475_v29  ;;  %v478_v27 = vsel %vm466_vm10, %v456_v33, %v459_v34  ;;  %v389_v22 = vsel %vm387_vm0, %v388_v36, %v1214_v17 }
 0x14a   :  { %v477_v38 = vsel %vm467_vm11, %v474_v37, %v476_v21  ;;  %v481_v39 = vsel %vm467_vm11, %v478_v27, %v480_v3  ;;  %v390_v6 = vadd.s32 %v389_v22, %v385_v30  ;;  %v472_v5 = vsel %vm468_vm9, %v456_v33, %v471_v23 }
 0x14b   :  { %v1231_v40 = vmul.u32.u64.low %v482_v32, %v481_v39  ;;  %v1232_v41 = vmul.u32.u64.high %v482_v32, %v481_v39, %v1231_v40  ;;  %v1234_v42 = vmul.u32.u64.low %v482_v32, %v477_v38  ;;  %v1235_v43 = vmul.u32.u64.high %v482_v32, %v477_v38, %v1234_v42 }
 0x14c   :  { %v391_v44 = vadd.s32 536870912, %v390_v6  ;;  %v473_v45 = vsel %vm467_vm11, %v470_v35, %v472_v5  ;;  %vm332_vm15 = vcmp.lt.s32.totalorder %v1182_v56, 0  ;;  %vm331_vm0 = vcmp.le.f32.partialorder %v330_v60, 0.7853982 }
 0x14d   :  { %vm491_vm12 = vc.u32 %v1232_v41, %v1234_v42  ;;  %v492_v47 = vadd.s32 1, %v1235_v43  ;;  %v489_v49 = vmul.u32 %v482_v32, %v473_v45  ;;  %v490_v34 = vadd.s32 %v1234_v42, %v1232_v41 }
 0x14e   :  { %v392_v46 = vshrl.u32 %v391_v44, 30  ;;  %vm436_vm9 = vcmp.lt.s32.totalorder %v1185_v57, 0  ;;  %vm435_vm10 = vcmp.le.f32.partialorder %v434_v4, 0.7853982 }
 0x14f   :  { %v493_v50 = vsel %vm491_vm12, %v492_v47, %v1235_v43 }
 0x150   :  { %v393_v48 = vshll.u32 %v392_v46, 30  ;;  %v494_v52 = vadd.s32 %v493_v50, %v489_v49  ;;  %v416_v27 = vsub.s32 4, %v392_v46 }
 0x152   :  { %v394_v51 = vsub.s32 %v390_v6, %v393_v48  ;;  %v495_v58 = vadd.s32 536870912, %v494_v52  ;;  %v417_v5 = vsel %vm332_vm15, %v416_v27, %v392_v46 }
 0x153   :  { %v419_v43 = vsel %vm331_vm0, 0, %v417_v5 }
 0x154   :  { %v396_v53 = vsub.s32 0, %v394_v51  ;;  %v496_v61 = vshrl.u32 %v495_v58, 30  ;;  %v423_v47 = vadd.s32 3, %v419_v43 }
 0x156   :  { %v904_v59 = vmin.u32 %v396_v53, %v394_v51  ;;  %v497_v63 = vshll.u32 %v496_v61, 30  ;;  %v520_v45 = vsub.s32 4, %v496_v61  ;;  %v424_v46 = vand.u32 3, %v423_v47 }
 0x158   :  { %v398_v62 = vclz %v904_v59  ;;  %v498_v20 = vsub.s32 %v494_v52, %v497_v63  ;;  %v521_v49 = vsel %vm436_vm9, %v520_v45, %v496_v61  ;;  %vm429_vm11 = vcmp.eq.s32.totalorder %v424_v46, 2  ;;  %v648_v61 = vpop.permute.xlu1 %647 }
 0x159   :  { %vm426_vm12 = vcmp.eq.s32.totalorder %v424_v46, 0 }
 0x15a   :  { %v905_v0 = vadd.s32 4294967294, %v398_v62  ;;  %v500_v11 = vsub.s32 0, %v498_v20 }
 0x15c   :  { %vm906_vm13 = vcmp.lt.s32.totalorder %v905_v0, 0  ;;  %v908_v16 = vmin.u32 %v500_v11, %v498_v20 }
 0x15d   :  { %v401_v1 = vsel %vm906_vm13, 0, %v905_v0  ;;  %vm425_vm13 = vcmp.lt.s32.totalorder %v424_v46, 2 }
 0x15e   :  { %v402_v13 = vsub.s32 32, %v401_v1  ;;  %v406_v15 = vsub.s32 4294967266, %v401_v1  ;;  %v403_v17 = vshll.u32 %v394_v51, %v401_v1  ;;  %v502_v25 = vclz %v908_v16 }
 0x15f   :  { %v523_v51 = vsel %vm435_vm10, 0, %v521_v49 }
 0x160   :  { %v404_v19 = vshrl.u32 %v386_v12, %v402_v13  ;;  %v407_v24 = vadd.s32 127, %v406_v15  ;;  %v909_v29 = vadd.s32 4294967294, %v502_v25  ;;  %v527_v62 = vadd.s32 3, %v523_v51  ;;  %v99_v25 = vld [vmem:[%s1330_s2] sm:$0xff]  ;;  %s1038_s2 = smov [#allocation5]  }
 0x161   :  { %s865_s12 = sshll.u32 %s1038_s2, 4  ;;  %s866_s12 = int_to_ptr.vmem [resolvable:$true] %s865_s12 }
 0x162   :  { %v405_v26 = vor.u32 %v404_v19, %v403_v17  ;;  %v408_v28 = vshll.u32 %v407_v24, 23  ;;  %vm910_vm14 = vcmp.lt.s32.totalorder %v909_v29, 0  ;;  %s991_s13 = scalar_lea.vmem %s866_s12, 128  ;;  %p996_p6 = scmp.lt.s32.totalorder %s866_s12, %s866_s12 }
 0x163   :  { %v505_v33 = vsel %vm910_vm14, 0, %v909_v29  ;;  %vm422_vm14 = vweird.f32 %v1182_v56  ;;  %p992_p5 = scmp.ne.s32.totalorder %s866_s12, %s991_s13  ;;  %p997_p7 = scmp.lt.s32.totalorder %s991_s13, %s991_s13 }
 0x164   :  { %v409_v30 = vor.u32 4788187, %v408_v28  ;;  %v412_v32 = vcvt.s32.f32 %v405_v26  ;;  %v506_v36 = vsub.s32 32, %v505_v33  ;;  %v510_v3 = vsub.s32 4294967266, %v505_v33 }
 0x165   :  { %v507_v18 = vshll.u32 %v498_v20, %v505_v33  ;;  %v528_v20 = vand.u32 3, %v527_v62  ;;  %p998_p8 = por %p997_p7, %p996_p6 }
 0x166   :  { %v410_v31 = vand.u32 2147483647, %v409_v30  ;;  %v508_v23 = vshrl.u32 %v490_v34, %v506_v36  ;;  %v511_v37 = vadd.s32 127, %v510_v3 }
 0x167   :  { %p999_p9 = pnand %p998_p8, %p992_p5 }
 0x168   :  { %v413_v14 = vmul.f32 %v412_v32, %v410_v31  ;;  %v509_v22 = vor.u32 %v508_v23, %v507_v18  ;;  %v512_v35 = vshll.u32 %v511_v37, 23 }
 0x16a   :  { %v414_v21 = vxor.u32 2147483648, %v413_v14  ;;  %v513_v6 = vor.u32 4788187, %v512_v35  ;;  %v516_v41 = vcvt.s32.f32 %v509_v22 }
 0x16c   :  { %v415_v38 = vsel %vm332_vm15, %v414_v21, %v413_v14  ;;  %v514_v40 = vand.u32 2147483647, %v513_v6  ;;  %vm533_vm15 = vcmp.eq.s32.totalorder %v528_v20, 2 }
 0x16d   :  { %v418_v39 = vsel %vm331_vm0, %v1182_v56, %v415_v38  ;;  %vm530_vm0 = vcmp.eq.s32.totalorder %v528_v20, 0 }
 0x16e   :  { %963 = vcosq.f32 %v418_v39  ;;  %v517_v42 = vmul.f32 %v516_v41, %v514_v40 }
 0x16f   :  { %965 = vsinq.f32 %v418_v39 }
 0x170   :  { %v518_v44 = vxor.u32 2147483648, %v517_v42 }
 0x172   :  { %v519_v60 = vsel %vm436_vm9, %v518_v44, %v517_v42  ;;  %vm529_vm9 = vcmp.lt.s32.totalorder %v528_v20, 2 }
 0x173   :  { %v522_v48 = vsel %vm435_vm10, %v1185_v57, %v519_v60  ;;  %vm526_vm10 = vweird.f32 %v1185_v57 }
 0x174   :  { %967 = vcosq.f32 %v522_v48 }
 0x175   :  { %969 = vsinq.f32 %v522_v48 }
 0x17b   :  { %v964_v50 = vpop.eup %963 }
 0x17c   :  { %v966_v52 = vpop.eup %965  ;;  %v430_v53 = vxor.u32 2147483648, %v964_v50 }
 0x17d   :  { %v427_v58 = vxor.u32 2147483648, %v966_v52 }
 0x17e   :  { %v431_v59 = vsel %vm429_vm11, %v430_v53, %v966_v52 }
 0x17f   :  { %v428_v63 = vsel %vm426_vm12, %v964_v50, %v427_v58 }
 0x180   :  { %v432_v4 = vsel %vm425_vm13, %v428_v63, %v431_v59  ;;  %vm687_vm13 = vcmask 80896  }
 0x181   :  { %v433_v0 = vsel %vm422_vm14, nan, %v432_v4  ;;  %v968_v11 = vpop.eup %967 }
 0x182   :  { %v642_v1 = vmul.f32 %v433_v0, %v433_v0  ;;  %v970_v13 = vpop.eup %969  ;;  %v534_v15 = vxor.u32 2147483648, %v968_v11 }
 0x183   :  { %v531_v16 = vxor.u32 2147483648, %v970_v13 }
 0x184   :  { %v650_v12 = vmul.f32 %v648_v61, %v642_v1  ;;  %v535_v19 = vsel %vm533_vm15, %v534_v15, %v970_v13 }
 0x185   :  { %v532_v24 = vsel %vm530_vm0, %v968_v11, %v531_v16 }
 0x186   :  { %v653_v17 = vadd.f32 %v650_v12, %v1177_v54  ;;  %v536_v56 = vsel %vm529_vm9, %v532_v24, %v535_v19  ;;  %v1260_v54 = vld [vmem:[#allocation3 + $0x8] sm:$0xff] }
 0x187   :  { %v537_v26 = vsel %vm526_vm10, nan, %v536_v56 }
 0x188   :  { %681 = vrot.lane.b32.xlu0 %v653_v17, %s1037_s4  ;;  %v643_v28 = vmul.f32 %v537_v26, %v537_v26 }
 0x18a   :  { %v651_v29 = vmul.f32 %v648_v61, %v643_v28 }
 0x18c   :  { %745 = vperm.xlu0 %956, %v99_v25   ;;  %v654_v30 = vadd.f32 %v651_v29, %v1179_v55 }
 0x18e   :  { %683 = vrot.lane.b32.xlu1 %v654_v30, %s1037_s4 }
 0x190   :  { %957 = vset.pattern.permute.xlu0 %v1018_v2  ;;  %v666_v2 = vlaneseq }
 0x191   :  { %769 = vperm.xlu0 %957, %v99_v25  }
 0x192   :  { %737 = vrot.lane.b32.xlu1 %v1260_v54, %s1019_s26 }
 0x195   :  { %958 = vset.pattern.permute.xlu0 %v1022_v8  ;;  %v667_v8 = vand.u32 127, %v666_v2 }
 0x196   :  { %793 = vperm.xlu0 %958, %v99_v25   ;;  %761 = vrot.lane.b32.xlu1 %v1260_v54, %s1021_s0 }
 0x197   :  { %v670_v55 = vadd.s32 4294967291, %v667_v8 }
 0x199   :  { %vm672_vm11 = vcmp.ge.s32.totalorder %v670_v55, 0  ;;  %vm674_vm12 = vcmp.lt.s32.totalorder %v670_v55, 16 }
 0x19a   :  { %959 = vset.pattern.permute.xlu0 %v1024_v9  ;;  %785 = vrot.lane.b32.xlu1 %v1260_v54, %s1023_s1  ;;  %vm676_vm14 = vmand %vm672_vm11, %vm674_vm12 }
 0x19b   :  { %817 = vperm.xlu0 %959, %v99_v25  }
 0x19e   :  { %809 = vrot.lane.b32.xlu1 %v1260_v54, %s1025_s27 }
 0x19f   :  { %960 = vset.pattern.permute.xlu0 %v1026_v10 }
 0x1a0   :  { %841 = vperm.xlu0 %960, %v99_v25  }
 0x1a4   :  { %961 = vset.pattern.permute.xlu0 %v1020_v7 }
 0x1a5   :  { %731 = vperm.xlu0 %961, %v99_v25  }
 0x1a9   :  { %962 = vset.pattern.permute.xlu0 %v1026_v10 }
 0x1fa   :  { %v682_v9 = vpop.permute.xlu0 %681 }
 0x200   :  { %v684_v57 = vpop.permute.xlu1 %683 }
 0x201   :  { %v688_v31 = vsel %vm687_vm13, %v682_v9, %v684_v57 }
 0x202   :  { %v1275_v32 = vsel %vm676_vm14, %v688_v31, 0.0 }
 0x203   :  { %735 = vrot.lane.b32.xlu1 %v1275_v32, %s1019_s26 }
 0x204   :  { %v738_v7 = vpop.permute.xlu1 %737 }
 0x205   :  { %v743_v33 = vadd.f32 %v738_v7, %v1260_v54 }
 0x207   :  { %759 = vrot.lane.b32.xlu1 %v1275_v32, %s1021_s0  ;;  %v746_v10 = vpop.permute.xlu0 %745 }
 0x208   :  { %v762_v34 = vpop.permute.xlu1 %761  ;;  %v749_v36 = vmul.f32 %v746_v10, %v743_v33 }
 0x209   :  { %v767_v3 = vadd.f32 %v762_v34, %v1260_v54 }
 0x20b   :  { %783 = vrot.lane.b32.xlu1 %v1275_v32, %s1023_s1 }
 0x20c   :  { %v770_v14 = vpop.permute.xlu0 %769  ;;  %v786_v18 = vpop.permute.xlu1 %785 }
 0x20d   :  { %v773_v23 = vmul.f32 %v770_v14, %v767_v3  ;;  %v791_v21 = vadd.f32 %v786_v18, %v1260_v54 }
 0x20f   :  { %807 = vrot.lane.b32.xlu1 %v1275_v32, %s1025_s27 }
 0x210   :  { %v810_v27 = vpop.permute.xlu1 %809 }
 0x211   :  { %v794_v37 = vpop.permute.xlu0 %793  ;;  %v815_v35 = vadd.f32 %v810_v27, %v1260_v54 }
 0x212   :  { %v797_v22 = vmul.f32 %v794_v37, %v791_v21 }
 0x213   :  { %831 = vrot.lane.b32.xlu1 %v1275_v32, %s1027_s28 }
 0x216   :  { %v818_v38 = vpop.permute.xlu0 %817 }
 0x217   :  { %833 = vrot.lane.b32.xlu1 %v1260_v54, %s1027_s28  ;;  %v821_v39 = vmul.f32 %v818_v38, %v815_v35 }
 0x21b   :  { %724 = vrot.lane.b32.xlu1 %v1260_v54, %s1028_s29  ;;  %v842_v59 = vpop.permute.xlu0 %841 }
 0x21f   :  { %754 = vrot.lane.b32.xlu1 %v749_v36, %s1027_s28 }
 0x220   :  { %v732_v12 = vpop.permute.xlu0 %731 }
 0x223   :  { %778 = vrot.lane.b32.xlu1 %v773_v23, %s1029_s3 }
 0x227   :  { %722 = vrot.lane.b32.xlu1 %v1275_v32, %s1028_s29 }
 0x22b   :  { %802 = vrot.lane.b32.xlu1 %v797_v22, %s1025_s27 }
 0x22f   :  { %826 = vrot.lane.b32.xlu1 %v821_v39, %s1030_s7 }
 0x275   :  { %v736_v6 = vpop.permute.xlu1 %735 }
 0x276   :  { %v739_v5 = vsel %vm131_vm1, %v736_v6, %v738_v7 }
 0x277   :  { %v742_v40 = vadd.f32 %v739_v5, %v1275_v32 }
 0x279   :  { %v760_v41 = vpop.permute.xlu1 %759  ;;  %v748_v42 = vmul.f32 %v746_v10, %v742_v40 }
 0x27a   :  { %v763_v43 = vsel %vm171_vm2, %v760_v41, %v762_v34 }
 0x27b   :  { %v766_v44 = vadd.f32 %v763_v43, %v1275_v32  ;;  %752 = vrot.lane.b32.xlu0 %v748_v42, %s1027_s28 }
 0x27d   :  { %v784_v45 = vpop.permute.xlu1 %783  ;;  %v772_v47 = vmul.f32 %v770_v14, %v766_v44 }
 0x27e   :  { %v787_v60 = vsel %vm211_vm3, %v784_v45, %v786_v18 }
 0x27f   :  { %v790_v48 = vadd.f32 %v787_v60, %v1275_v32  ;;  %776 = vrot.lane.b32.xlu0 %v772_v47, %s1029_s3 }
 0x281   :  { %v808_v49 = vpop.permute.xlu1 %807  ;;  %v796_v46 = vmul.f32 %v794_v37, %v790_v48 }
 0x282   :  { %v811_v50 = vsel %vm236_vm4, %v808_v49, %v810_v27 }
 0x283   :  { %v814_v51 = vadd.f32 %v811_v50, %v1275_v32  ;;  %800 = vrot.lane.b32.xlu0 %v796_v46, %s1025_s27 }
 0x285   :  { %v832_v52 = vpop.permute.xlu1 %831  ;;  %v820_v53 = vmul.f32 %v818_v38, %v814_v51 }
 0x287   :  { %824 = vrot.lane.b32.xlu0 %v820_v53, %s1030_s7 }
 0x289   :  { %v834_v58 = vpop.permute.xlu1 %833 }
 0x28a   :  { %v835_v62 = vsel %vm155_vm5, %v832_v52, %v834_v58  ;;  %v839_v63 = vadd.f32 %v834_v58, %v1260_v54 }
 0x28b   :  { %v838_v4 = vadd.f32 %v835_v62, %v1275_v32 }
 0x28c   :  { %v845_v0 = vmul.f32 %v842_v59, %v839_v63 }
 0x28d   :  { %v844_v20 = vmul.f32 %v842_v59, %v838_v4  ;;  %v725_v1 = vpop.permute.xlu1 %724 }
 0x28e   :  { %850 = vrot.lane.b32.xlu1 %v845_v0, %s1023_s1 }
 0x28f   :  { %848 = vrot.lane.b32.xlu0 %v844_v20, %s1023_s1 }
 0x291   :  { %v755_v61 = vpop.permute.xlu1 %754 }
 0x295   :  { %v779_v11 = vpop.permute.xlu1 %778 }
 0x299   :  { %v723_v15 = vpop.permute.xlu1 %722 }
 0x29a   :  { %v726_v17 = vsel %vm111_vm6, %v723_v15, %v725_v1 }
 0x29b   :  { %v728_v19 = vadd.f32 %v726_v17, %v1275_v32 }
 0x29d   :  { %v803_v56 = vpop.permute.xlu1 %802  ;;  %v734_v26 = vmul.f32 %v732_v12, %v728_v19 }
 0x2a1   :  { %v827_v54 = vpop.permute.xlu1 %826 }
 0x2ed   :  { %v753_v13 = vpop.permute.xlu0 %752 }
 0x2ee   :  { %v756_v25 = vsel %vm155_vm5, %v753_v13, %v755_v61 }
 0x2ef   :  { %v758_v29 = vadd.f32 %v756_v25, %v734_v26 }
 0x2f1   :  { %v777_v16 = vpop.permute.xlu0 %776 }
 0x2f2   :  { %v780_v28 = vsel %vm196_vm7, %v777_v16, %v779_v11 }
 0x2f3   :  { %v782_v8 = vadd.f32 %v780_v28, %v758_v29 }
 0x2f5   :  { %v801_v24 = vpop.permute.xlu0 %800 }
 0x2f6   :  { %v804_v2 = vsel %vm236_vm4, %v801_v24, %v803_v56 }
 0x2f7   :  { %v806_v9 = vadd.f32 %v804_v2, %v782_v8 }
 0x2f9   :  { %v825_v30 = vpop.permute.xlu0 %824 }
 0x2fa   :  { %v828_v55 = vsel %vm275_vm8, %v825_v30, %v827_v54 }
 0x2fb   :  { %v830_v31 = vadd.f32 %v828_v55, %v806_v9 }
 0x300   :  { %v851_v57 = vpop.permute.xlu1 %850 }
 0x301   :  { %v849_v32 = vpop.permute.xlu0 %848 }
 0x302   :  { %v852_v7 = vsel %vm211_vm3, %v849_v32, %v851_v57 }
 0x303   :  { %v854_v10 = vadd.f32 %v852_v7, %v830_v31 }
 0x305   :  { %855 = vst [vmem:[#allocation5] sm:$0xff] %v854_v10 }
 0x306   :  { %1002 = shalt.err (!%p999_p9)
}
 0x307   :  { %868 = dma.vmem_to_hbm [thread:$0]  %s866_s12, 128, %s1333_s5, [#allocation6]  }
 0x308   :  { %1013 = dma.done.wait [#allocation6], 128  }
 0x309   :  { %1014 = vsyncadd [#allocation6], 4294967168 }
 0x30a   :  { %872 = vsyncpa [#allocation6], 1 }
 0x30b   :  { %873 = vsyncmov [#allocation4] }
 0x30e   :  { %s874_s16 = vpop.sfrf %873 }
 0x30f   :  { %p915_p10 = scmp.ne.s32.totalorder %s874_s16, 0 }
 0x311   :  { %878 = shalt.err (%p915_p10)  }
 0x312   :  { %880 = vsyncmov [#allocation4 + $0x1] }
 0x315   :  { %s881_s17 = vpop.sfrf %880 }
 0x316   :  { %p916_p11 = scmp.ne.s32.totalorder %s881_s17, 0 }
 0x318   :  { %885 = shalt.err (%p916_p11)  }

</bundles_post_ra>
